<compile_context>
chip_gen: v7x
topology: tpu7x:2x2x1
jax: 0.10.0
libtpu: 0.0.40
codegen_flags: <defaults>
</compile_context>

<pallas_src>
import collections

import jax
import jax.numpy as jnp
from jax.experimental import pallas as pl
from jax.experimental.pallas import tpu as pltpu

MultiGraph = collections.namedtuple('Graph', ['node_features', 'edge_sets'])
EdgeSet = collections.namedtuple('EdgeSet',
                                 ['name', 'features', 'senders', 'receivers'])

LATENT_SIZE = 32   # latent_size passed to Encoder(...)
HIDDEN_SIZE = 32   # hidden width used by make_mlp
LN_EPS = 1e-5      # PyTorch nn.LayerNorm default eps
# Rows packed per 128-lane group (4 * 32 = 128 lanes).  PACK=4 already fills
# the v5e MXU (128-deep).  On v6e/v7x with bf16 operands, PACK=8 (K=N=256)
# fills the 256-deep MXU and is worth sweeping once the kernel is MXU-bound.
PACK = 4
COMPUTE_DTYPE = jnp.bfloat16


def _mlp_ln_kernel(x_ref, w0_ref, b0_ref, w1_ref, b1_ref, w2_ref, b2_ref,
                   gamma_ref, beta_ref, mavg_ref, out_ref):
    """One super-row tile of the packed MLP + per-32-lane-subgroup LayerNorm.

    x_ref:    [T, PACK*F_pad] bf16   (PACK original rows per super row, lane-packed)
    w*_ref:   block-diagonal bf16 weights ([PACK*F_pad, PACK*32], [PACK*32, PACK*32])
    b*/gamma/beta: [1, PACK*32] f32  (original [1,32] tiled PACK times along lanes)
    mavg_ref: [PACK*32, PACK*32] f32 block-diag of (1/32)*ones(32,32)
    out_ref:  [T, PACK*32]           (PACK latent rows per super row)
    """
    x = x_ref[...]
    cd = x.dtype

    h = jnp.dot(x, w0_ref[...], preferred_element_type=jnp.float32) + b0_ref[...]
    h = jnp.maximum(h, 0.0).astype(cd)
    h = jnp.dot(h, w1_ref[...], preferred_element_type=jnp.float32) + b1_ref[...]
    h = jnp.maximum(h, 0.0).astype(cd)
    h = jnp.dot(h, w2_ref[...], preferred_element_type=jnp.float32) + b2_ref[...]

    # LayerNorm per 32-lane subgroup via a block-averaging matmul, so we never
    # reshape across the lane dimension.  Statistics stay in f32.
    mavg = mavg_ref[...]
    mean = jnp.dot(h, mavg, preferred_element_type=jnp.float32)
    centered = h - mean
    var = jnp.dot(centered * centered, mavg, preferred_element_type=jnp.float32)
    y = centered * jax.lax.rsqrt(var + LN_EPS)
    out_ref[...] = (y * gamma_ref[...] + beta_ref[...]).astype(out_ref.dtype)


def make_mlp_params(key, in_dim, hidden, out_dim):
    """Deterministic init of the MLP (Linear x3) + LayerNorm parameters (f32)."""
    ks = jax.random.split(key, 6)
    scale0 = 1.0 / jnp.sqrt(in_dim)
    scale1 = 1.0 / jnp.sqrt(hidden)
    w0 = jax.random.uniform(ks[0], (in_dim, hidden), jnp.float32, -scale0, scale0)
    b0 = jax.random.uniform(ks[1], (1, hidden), jnp.float32, -scale0, scale0)
    w1 = jax.random.uniform(ks[2], (hidden, hidden), jnp.float32, -scale1, scale1)
    b1 = jax.random.uniform(ks[3], (1, hidden), jnp.float32, -scale1, scale1)
    w2 = jax.random.uniform(ks[4], (hidden, out_dim), jnp.float32, -scale1, scale1)
    b2 = jax.random.uniform(ks[5], (1, out_dim), jnp.float32, -scale1, scale1)
    gamma = jnp.ones((1, out_dim), jnp.float32)
    beta = jnp.zeros((1, out_dim), jnp.float32)
    return (w0, b0, w1, b1, w2, b2, gamma, beta)


def pack_mlp_params(params, *, pack=PACK, compute_dtype=COMPUTE_DTYPE):
    """Build lane-packed (block-diagonal) bf16 weights + f32 LN/bias params."""
    w0, b0, w1, b1, w2, b2, gamma, beta = params
    in_dim = w0.shape[0]
    latent = w2.shape[1]
    # Pad the first layer's K dim to a sublane multiple (zero rows are harmless).
    f_pad = pl.cdiv(in_dim, 8) * 8
    w0_padded = jnp.pad(w0, ((0, f_pad - in_dim), (0, 0)))

    eye = jnp.eye(pack, dtype=jnp.float32)
    blockdiag = lambda w: jnp.kron(eye, w.astype(jnp.float32)).astype(compute_dtype)
    tile_lanes = lambda v: jnp.tile(jnp.reshape(v.astype(jnp.float32), (1, -1)),
                                    (1, pack))

    mavg = jnp.kron(eye, jnp.full((latent, latent), 1.0 / latent, jnp.float32))

    return (blockdiag(w0_padded), tile_lanes(b0),
            blockdiag(w1), tile_lanes(b1),
            blockdiag(w2), tile_lanes(b2),
            tile_lanes(gamma), tile_lanes(beta), mavg)


def mlp_forward(x, packed_params, *, pack=PACK, tile_rows=8192,
                compute_dtype=COMPUTE_DTYPE, out_dtype=None):
    """Apply the packed MLP+LayerNorm kernel to x: [N, F] -> [N, LATENT_SIZE]."""
    n, feat = x.shape
    if out_dtype is None:
        out_dtype = x.dtype          # keep module semantics; pass bf16 to halve writes
    f_pad = packed_params[0].shape[0] // pack
    out_packed_dim = packed_params[4].shape[1]   # pack * latent
    latent = out_packed_dim // pack

    # Super-row tiling (each super row = `pack` original rows, pack*32 lanes wide).
    n_super = pl.cdiv(n, pack)
    n_rows = n_super * pack          # pad rows only to a multiple of pack (<= pack-1)

    tile_super = max(8, (tile_rows // pack) // 8 * 8)
    tile_super = min(tile_super, pl.cdiv(n_super, 8) * 8)     # don't exceed the input
    if n_super > 8:
        # Ensure >= 2 grid steps so both v7x TensorCores get work.
        tile_super = min(tile_super, pl.cdiv(pl.cdiv(n_super, 2), 8) * 8)
    num_tiles = pl.cdiv(n_super, tile_super)

    # One fused XLA pass: cast to bf16 (+ tiny pad).  The ragged super-row tail
    # is handled by the cdiv grid, not by padding N up to num_tiles*tile_super.
    x = x.astype(compute_dtype)
    if f_pad != feat or n_rows != n:
        x = jnp.pad(x, ((0, n_rows - n), (0, f_pad - feat)))
    x_packed = x.reshape(n_super, pack * f_pad)   # row-major: free repack

    full_spec = lambda p: pl.BlockSpec(p.shape, lambda i: (0, 0))
    out_packed = pl.pallas_call(
        _mlp_ln_kernel,
        out_shape=jax.ShapeDtypeStruct((n_super, out_packed_dim), out_dtype),
        grid_spec=pltpu.PrefetchScalarGridSpec(
            num_scalar_prefetch=0,
            grid=(num_tiles,),
            in_specs=[pl.BlockSpec((tile_super, pack * f_pad), lambda i: (i, 0))]
                     + [full_spec(p) for p in packed_params],
            out_specs=pl.BlockSpec((tile_super, out_packed_dim), lambda i: (i, 0)),
        ),
        compiler_params=pltpu.CompilerParams(
            dimension_semantics=("parallel",)),
    )(x_packed, *packed_params)

    out = out_packed.reshape(n_rows, latent)
    return out if n_rows == n else out[:n]


def encoder_forward(graph, node_packed_params, edge_packed_params, *,
                    tile_rows=8192):
    """Pallas re-implementation of Encoder.forward."""
    node_latents = mlp_forward(graph.node_features, node_packed_params,
                               tile_rows=tile_rows)
    # One pallas_call per edge set (shared mesh_edge_model parameters).  No
    # wrapper-side concat/slice: that was an extra HBM round trip per feature.
    new_edge_sets = []
    for es in graph.edge_sets:
        latents = mlp_forward(es.features, edge_packed_params,
                              tile_rows=tile_rows)
        new_edge_sets.append(es._replace(features=latents))
    return MultiGraph(node_latents, new_edge_sets)


def _reference_mlp(x, params, compute_dtype=COMPUTE_DTYPE):
    """Pure-JAX reference with the same mixed-precision recipe as the kernel."""
    w0, b0, w1, b1, w2, b2, gamma, beta = params
    cd = compute_dtype
    h = jnp.dot(x.astype(cd), w0.astype(cd),
                preferred_element_type=jnp.float32) + b0
    h = jnp.maximum(h, 0.0).astype(cd)
    h = jnp.dot(h, w1.astype(cd), preferred_element_type=jnp.float32) + b1
    h = jnp.maximum(h, 0.0).astype(cd)
    h = jnp.dot(h, w2.astype(cd), preferred_element_type=jnp.float32) + b2
    mean = jnp.mean(h, axis=-1, keepdims=True)
    var = jnp.mean((h - mean) ** 2, axis=-1, keepdims=True)
    return (h - mean) * jax.lax.rsqrt(var + LN_EPS) * gamma + beta


if __name__ == "__main__":
    key = jax.random.PRNGKey(0)
    k_nf, k_ef1, k_ef2, k_np, k_ep, k_idx = jax.random.split(key, 6)

    num_nodes, node_dim = 64, 12
    num_mesh_edges, num_world_edges, edge_dim = 128, 100, 7  # 100: ragged last tile

    node_features = jax.random.normal(k_nf, (num_nodes, node_dim), jnp.float32)
    mesh_edge_features = jax.random.normal(k_ef1, (num_mesh_edges, edge_dim), jnp.float32)
    world_edge_features = jax.random.normal(k_ef2, (num_world_edges, edge_dim), jnp.float32)

    senders1 = jax.random.randint(k_idx, (num_mesh_edges,), 0, num_nodes)
    receivers1 = jax.random.randint(jax.random.fold_in(k_idx, 1),
                                    (num_mesh_edges,), 0, num_nodes)
    senders2 = jax.random.randint(jax.random.fold_in(k_idx, 2),
                                  (num_world_edges,), 0, num_nodes)
    receivers2 = jax.random.randint(jax.random.fold_in(k_idx, 3),
                                    (num_world_edges,), 0, num_nodes)

    graph = MultiGraph(
        node_features=node_features,
        edge_sets=[
            EdgeSet("mesh_edges", mesh_edge_features, senders1, receivers1),
            EdgeSet("world_edges", world_edge_features, senders2, receivers2),
        ],
    )

    node_params = make_mlp_params(k_np, node_dim, HIDDEN_SIZE, LATENT_SIZE)
    edge_params = make_mlp_params(k_ep, edge_dim, HIDDEN_SIZE, LATENT_SIZE)
    node_packed = pack_mlp_params(node_params)
    edge_packed = pack_mlp_params(edge_params)

    out_graph = encoder_forward(graph, node_packed, edge_packed)
    jax.block_until_ready(out_graph.node_features)
    jax.block_until_ready(out_graph.edge_sets[0].features)
    jax.block_until_ready(out_graph.edge_sets[1].features)

    # Correctness check against a pure-JAX reference (same bf16/f32 recipe).
    ref_nodes = _reference_mlp(node_features, node_params)
    ref_mesh = _reference_mlp(mesh_edge_features, edge_params)
    ref_world = _reference_mlp(world_edge_features, edge_params)

    assert out_graph.node_features.shape == (num_nodes, LATENT_SIZE)
    assert out_graph.edge_sets[0].features.shape == (num_mesh_edges, LATENT_SIZE)
    assert out_graph.edge_sets[1].features.shape == (num_world_edges, LATENT_SIZE)
    assert jnp.allclose(out_graph.node_features, ref_nodes, atol=1e-2, rtol=1e-2)
    assert jnp.allclose(out_graph.edge_sets[0].features, ref_mesh, atol=1e-2, rtol=1e-2)
    assert jnp.allclose(out_graph.edge_sets[1].features, ref_world, atol=1e-2, rtol=1e-2)

    print("KERNEL_OK")
</pallas_src>

<mosaic_0001>
module attributes {stable_mosaic.version = 11 : i64} {
  func.func @_mlp_ln_kernel(%arg0: i32, %arg1: memref<8x64xbf16, #tpu.memory_space<vmem>>, %arg2: memref<64x128xbf16, #tpu.memory_space<vmem>>, %arg3: memref<1x128xf32, #tpu.memory_space<vmem>>, %arg4: memref<128x128xbf16, #tpu.memory_space<vmem>>, %arg5: memref<1x128xf32, #tpu.memory_space<vmem>>, %arg6: memref<128x128xbf16, #tpu.memory_space<vmem>>, %arg7: memref<1x128xf32, #tpu.memory_space<vmem>>, %arg8: memref<1x128xf32, #tpu.memory_space<vmem>>, %arg9: memref<1x128xf32, #tpu.memory_space<vmem>>, %arg10: memref<128x128xf32, #tpu.memory_space<vmem>>, %arg11: memref<8x128xf32, #tpu.memory_space<vmem>>) attributes {dimension_semantics = [#tpu.dimension_semantics<parallel>], iteration_bounds = array<i64: 2>, scalar_prefetch = 0 : i64, scratch_operands = 0 : i64, tpu.core_type = #tpu.core_type<tc>, window_params = [{transform_indices = @transform_0, window_bounds = array<i64: 8, 64>}, {pipeline_mode = #tpu.pipeline_mode<synchronous>, transform_indices = @transform_1, window_bounds = array<i64: 64, 128>}, {pipeline_mode = #tpu.pipeline_mode<synchronous>, transform_indices = @transform_2, window_bounds = array<i64: 1, 128>}, {pipeline_mode = #tpu.pipeline_mode<synchronous>, transform_indices = @transform_3, window_bounds = array<i64: 128, 128>}, {pipeline_mode = #tpu.pipeline_mode<synchronous>, transform_indices = @transform_4, window_bounds = array<i64: 1, 128>}, {pipeline_mode = #tpu.pipeline_mode<synchronous>, transform_indices = @transform_5, window_bounds = array<i64: 128, 128>}, {pipeline_mode = #tpu.pipeline_mode<synchronous>, transform_indices = @transform_6, window_bounds = array<i64: 1, 128>}, {pipeline_mode = #tpu.pipeline_mode<synchronous>, transform_indices = @transform_7, window_bounds = array<i64: 1, 128>}, {pipeline_mode = #tpu.pipeline_mode<synchronous>, transform_indices = @transform_8, window_bounds = array<i64: 1, 128>}, {pipeline_mode = #tpu.pipeline_mode<synchronous>, transform_indices = @transform_9, window_bounds = array<i64: 128, 128>}, {transform_indices = @transform_10, window_bounds = array<i64: 8, 128>}]} {
    %c0 = arith.constant 0 : index
    %c0_0 = arith.constant 0 : index
    %0 = vector.load %arg1[%c0, %c0_0] : memref<8x64xbf16, #tpu.memory_space<vmem>>, vector<8x64xbf16>
    %c0_1 = arith.constant 0 : index
    %c0_2 = arith.constant 0 : index
    %1 = vector.load %arg2[%c0_1, %c0_2] : memref<64x128xbf16, #tpu.memory_space<vmem>>, vector<64x128xbf16>
    %cst = arith.constant dense<0.000000e+00> : vector<8x128xf32>
    %2 = tpu.matmul %0, %1, %cst {dimension_numbers = #tpu.dot_dimension_numbers<[1], [0], [0], [1], [0, 0, 1, 1], [], []>} : vector<8x64xbf16>, vector<64x128xbf16>, vector<8x128xf32> -> vector<8x128xf32>
    %c0_3 = arith.constant 0 : index
    %c0_4 = arith.constant 0 : index
    %3 = vector.load %arg3[%c0_3, %c0_4] : memref<1x128xf32, #tpu.memory_space<vmem>>, vector<1x128xf32>
    %4 = vector.broadcast %3 : vector<1x128xf32> to vector<8x128xf32>
    %5 = arith.addf %2, %4 : vector<8x128xf32>
    %cst_5 = arith.constant 0.000000e+00 : f32
    %6 = vector.broadcast %cst_5 : f32 to vector<8x128xf32>
    %7 = arith.maximumf %5, %6 : vector<8x128xf32>
    %8 = arith.truncf %7 : vector<8x128xf32> to vector<8x128xbf16>
    %c0_6 = arith.constant 0 : index
    %c0_7 = arith.constant 0 : index
    %9 = vector.load %arg4[%c0_6, %c0_7] : memref<128x128xbf16, #tpu.memory_space<vmem>>, vector<128x128xbf16>
    %cst_8 = arith.constant dense<0.000000e+00> : vector<8x128xf32>
    %10 = tpu.matmul %8, %9, %cst_8 {dimension_numbers = #tpu.dot_dimension_numbers<[1], [0], [0], [1], [0, 0, 1, 1], [], []>} : vector<8x128xbf16>, vector<128x128xbf16>, vector<8x128xf32> -> vector<8x128xf32>
    %c0_9 = arith.constant 0 : index
    %c0_10 = arith.constant 0 : index
    %11 = vector.load %arg5[%c0_9, %c0_10] : memref<1x128xf32, #tpu.memory_space<vmem>>, vector<1x128xf32>
    %12 = vector.broadcast %11 : vector<1x128xf32> to vector<8x128xf32>
    %13 = arith.addf %10, %12 : vector<8x128xf32>
    %cst_11 = arith.constant 0.000000e+00 : f32
    %14 = vector.broadcast %cst_11 : f32 to vector<8x128xf32>
    %15 = arith.maximumf %13, %14 : vector<8x128xf32>
    %16 = arith.truncf %15 : vector<8x128xf32> to vector<8x128xbf16>
    %c0_12 = arith.constant 0 : index
    %c0_13 = arith.constant 0 : index
    %17 = vector.load %arg6[%c0_12, %c0_13] : memref<128x128xbf16, #tpu.memory_space<vmem>>, vector<128x128xbf16>
    %cst_14 = arith.constant dense<0.000000e+00> : vector<8x128xf32>
    %18 = tpu.matmul %16, %17, %cst_14 {dimension_numbers = #tpu.dot_dimension_numbers<[1], [0], [0], [1], [0, 0, 1, 1], [], []>} : vector<8x128xbf16>, vector<128x128xbf16>, vector<8x128xf32> -> vector<8x128xf32>
    %c0_15 = arith.constant 0 : index
    %c0_16 = arith.constant 0 : index
    %19 = vector.load %arg7[%c0_15, %c0_16] : memref<1x128xf32, #tpu.memory_space<vmem>>, vector<1x128xf32>
    %20 = vector.broadcast %19 : vector<1x128xf32> to vector<8x128xf32>
    %21 = arith.addf %18, %20 : vector<8x128xf32>
    %c0_17 = arith.constant 0 : index
    %c0_18 = arith.constant 0 : index
    %22 = vector.load %arg10[%c0_17, %c0_18] : memref<128x128xf32, #tpu.memory_space<vmem>>, vector<128x128xf32>
    %cst_19 = arith.constant dense<0.000000e+00> : vector<8x128xf32>
    %23 = tpu.matmul %21, %22, %cst_19 {dimension_numbers = #tpu.dot_dimension_numbers<[1], [0], [0], [1], [0, 0, 1, 1], [], []>} : vector<8x128xf32>, vector<128x128xf32>, vector<8x128xf32> -> vector<8x128xf32>
    %24 = arith.subf %21, %23 : vector<8x128xf32>
    %25 = arith.mulf %24, %24 : vector<8x128xf32>
    %cst_20 = arith.constant dense<0.000000e+00> : vector<8x128xf32>
    %26 = tpu.matmul %25, %22, %cst_20 {dimension_numbers = #tpu.dot_dimension_numbers<[1], [0], [0], [1], [0, 0, 1, 1], [], []>} : vector<8x128xf32>, vector<128x128xf32>, vector<8x128xf32> -> vector<8x128xf32>
    %cst_21 = arith.constant 9.99999974E-6 : f32
    %27 = vector.broadcast %cst_21 : f32 to vector<8x128xf32>
    %28 = arith.addf %26, %27 : vector<8x128xf32>
    %29 = math.rsqrt %28 : vector<8x128xf32>
    %30 = arith.mulf %24, %29 : vector<8x128xf32>
    %c0_22 = arith.constant 0 : index
    %c0_23 = arith.constant 0 : index
    %31 = vector.load %arg8[%c0_22, %c0_23] : memref<1x128xf32, #tpu.memory_space<vmem>>, vector<1x128xf32>
    %32 = vector.broadcast %31 : vector<1x128xf32> to vector<8x128xf32>
    %33 = arith.mulf %30, %32 : vector<8x128xf32>
    %c0_24 = arith.constant 0 : index
    %c0_25 = arith.constant 0 : index
    %34 = vector.load %arg9[%c0_24, %c0_25] : memref<1x128xf32, #tpu.memory_space<vmem>>, vector<1x128xf32>
    %35 = vector.broadcast %34 : vector<1x128xf32> to vector<8x128xf32>
    %36 = arith.addf %33, %35 : vector<8x128xf32>
    %c0_26 = arith.constant 0 : index
    %c0_27 = arith.constant 0 : index
    %37 = vector.load %arg11[%c0_26, %c0_27] : memref<8x128xf32, #tpu.memory_space<vmem>>, vector<8x128xf32>
    tpu.vector_store %arg11[%c0_26, %c0_27], %36 {strides = array<i32>} : memref<8x128xf32, #tpu.memory_space<vmem>>, vector<8x128xf32>,
    return
  }
  func.func @transform_0(%arg0: i32) -> (i32, i32) {
    %c0_i32 = arith.constant 0 : i32
    %c0_i32_0 = arith.constant 0 : i32
    return %arg0, %c0_i32 : i32, i32
  }
  func.func @transform_1(%arg0: i32) -> (i32, i32) {
    %c0_i32 = arith.constant 0 : i32
    %c0_i32_0 = arith.constant 0 : i32
    %c0_i32_1 = arith.constant 0 : i32
    return %c0_i32, %c0_i32_0 : i32, i32
  }
  func.func @transform_2(%arg0: i32) -> (i32, i32) {
    %c0_i32 = arith.constant 0 : i32
    %c0_i32_0 = arith.constant 0 : i32
    %c0_i32_1 = arith.constant 0 : i32
    return %c0_i32, %c0_i32_0 : i32, i32
  }
  func.func @transform_3(%arg0: i32) -> (i32, i32) {
    %c0_i32 = arith.constant 0 : i32
    %c0_i32_0 = arith.constant 0 : i32
    %c0_i32_1 = arith.constant 0 : i32
    return %c0_i32, %c0_i32_0 : i32, i32
  }
  func.func @transform_4(%arg0: i32) -> (i32, i32) {
    %c0_i32 = arith.constant 0 : i32
    %c0_i32_0 = arith.constant 0 : i32
    %c0_i32_1 = arith.constant 0 : i32
    return %c0_i32, %c0_i32_0 : i32, i32
  }
  func.func @transform_5(%arg0: i32) -> (i32, i32) {
    %c0_i32 = arith.constant 0 : i32
    %c0_i32_0 = arith.constant 0 : i32
    %c0_i32_1 = arith.constant 0 : i32
    return %c0_i32, %c0_i32_0 : i32, i32
  }
  func.func @transform_6(%arg0: i32) -> (i32, i32) {
    %c0_i32 = arith.constant 0 : i32
    %c0_i32_0 = arith.constant 0 : i32
    %c0_i32_1 = arith.constant 0 : i32
    return %c0_i32, %c0_i32_0 : i32, i32
  }
  func.func @transform_7(%arg0: i32) -> (i32, i32) {
    %c0_i32 = arith.constant 0 : i32
    %c0_i32_0 = arith.constant 0 : i32
    %c0_i32_1 = arith.constant 0 : i32
    return %c0_i32, %c0_i32_0 : i32, i32
  }
  func.func @transform_8(%arg0: i32) -> (i32, i32) {
    %c0_i32 = arith.constant 0 : i32
    %c0_i32_0 = arith.constant 0 : i32
    %c0_i32_1 = arith.constant 0 : i32
    return %c0_i32, %c0_i32_0 : i32, i32
  }
  func.func @transform_9(%arg0: i32) -> (i32, i32) {
    %c0_i32 = arith.constant 0 : i32
    %c0_i32_0 = arith.constant 0 : i32
    %c0_i32_1 = arith.constant 0 : i32
    return %c0_i32, %c0_i32_0 : i32, i32
  }
  func.func @transform_10(%arg0: i32) -> (i32, i32) {
    %c0_i32 = arith.constant 0 : i32
    %c0_i32_0 = arith.constant 0 : i32
    return %arg0, %c0_i32 : i32, i32
  }
}

</mosaic_0001>

<bundles_post_ra>
// kernel: tpu_custom_call.1
= control target key start
LH: loop header
LB: loop body
LE: loop exit
PB: predicated region body
PF: predicated region fallthrough
CT: control target
= control target key end

     0   :  { %s2053_s0 = inlined_call_operand.hbm [shape: bf16[16,64], index: 0, kind: input, shape index: {}]   ;;  %s2054_s1 = inlined_call_operand.hbm [shape: bf16[64,128], index: 1, kind: input, shape index: {}]   ;;  %s2055_s2 = inlined_call_operand.vmem [shape: f32[1,128], index: 2, kind: input, shape index: {}]   ;;  %s2056_s3 = inlined_call_operand.hbm [shape: bf16[128,128], index: 3, kind: input, shape index: {}]   ;;  %s2057_s4 = inlined_call_operand.vmem [shape: f32[1,128], index: 4, kind: input, shape index: {}]   ;;  %s2058_s5 = inlined_call_operand.hbm [shape: bf16[128,128], index: 5, kind: input, shape index: {}]   ;;  %s2059_s6 = inlined_call_operand.vmem [shape: f32[1,128], index: 6, kind: input, shape index: {}]   ;;  %s2060_s7 = inlined_call_operand.vmem [shape: f32[1,128], index: 7, kind: input, shape index: {}]   ;;  %s2061_s8 = inlined_call_operand.vmem [shape: f32[1,128], index: 8, kind: input, shape index: {}]   ;;  %s2062_s9 = inlined_call_operand.hbm [shape: f32[128,128], index: 9, kind: input, shape index: {}]   ;;  %s2063_s10 = inlined_call_operand.hbm [shape: f32[16,128], index: 10, kind: output, shape index: {}]  }
   0x1   :  { %2068 = sst [smem:[#allocation16_spill]] %s2054_s1 }
   0x2   :  { %2069 = sst [smem:[#allocation17_spill]] %s2061_s8 }
   0x3   :  { %2070 = sst [smem:[#allocation18_spill]] %s2063_s10 }
   0x4   :  { %15 = vsyncpa [#allocation3], 0 }
   0x5   :  { %17 = vsyncpa [#allocation3 + $0x1], 0 }
   0x6   :  { %18 = vsyncpa [#allocation6], 0 }
   0x7   :  { %19 = vsyncpa [#allocation9], 0 }
   0x8   :  { %20 = vsyncpa [#allocation4], 0 }
   0x9   :  { %22 = vsyncpa [#allocation4 + $0x1], 0  ;;  %s1718_s13 = smov 0   ;;  %s1720_s14 = smov 0  }
   0xa   :  { %s1722_s15 = smov 0   ;;  %s1724_s16 = smov 0  }
   0xb LB: > { %s1650_s17 = smov [#allocation5]   ;;  %s1739_s19 = sadd.s32 4294967295, %s1648_s16   ;;  %s1648_s16 = sphi %s1724_s16, %s2094_s16   ;;  %s1644_s15 = sphi %s1722_s15, %s2093_s15   ;;  %s1640_s14 = sphi %s1720_s14, %s2092_s14   ;;  %s1636_s13 = sphi %s1718_s13, %s2091_s13  }
   0xc   : > { %s286_s18 = sshll.u32 %s1650_s17, 4  ;;  %p1044_p0 = scmp.ge.s32.totalorder %s1648_s16, 1  ;;  %s1744_s18 = int_to_ptr.vmem [resolvable:$true] %s286_s18 }
   0xd   : > { %p2065_p1 = scmp.eq.s32.totalorder %s1739_s19, 0  ;;  %p274_p2 = scmp.lt.s32.totalorder %s1648_s16, 3 }
   0xe   : > { %s1651_s21 = smov [#allocation8]   ;;  %s1652_s24 = smov [#allocation7]  }
   0xf   : > { %p1746_p3 = pnand %p1044_p0, %p274_p2  ;;  %s318_s22 = sshll.u32 %s1651_s21, 4  ;;  %s1759_s22 = int_to_ptr.vmem [resolvable:$true] %s318_s22 }
  0x10   : > { %s302_s25 = sshll.u32 %s1652_s24, 4  ;;  %s2073_s1 = sld [smem:[#allocation16_spill]]  ;;  %s1761_s25 = int_to_ptr.vmem [resolvable:$true] %s302_s25 }
  0x11   : > { %s2071_s20 = scalar_select %p1746_p3, 1, 0 }
  0x12   : > { %p1336_p5 = pneg %p1746_p3 }
  0x14   : > { %p1755_p6 = pnand %p1336_p5, %p2065_p1 }
  0x16   : > { %s1432_s28 = scalar_lea.hbm %s2073_s1, 512  ;;  %p1771_p8 = pneg %p1755_p6 }
  0x17   : > { %p1433_p7 = scmp.ne.s32.totalorder %s2073_s1, %s1432_s28  ;;  %p1439_p11 = scmp.lt.u32.totalorder %s1432_s28, %s2073_s1 }
  0x19   : > { %p1435_p9 = pnand %p1771_p8, %p1433_p7 }
  0x1b   : > { %p1436_p10 = pneg %p1435_p9 }
  0x1d   : > { %p1441_p12 = pnand %p1439_p11, %p1436_p10 }
  0x1f   : > { %1444 = shalt.err (!%p1441_p12)
}
  0x20   : > { %s1445_s21 = scalar_lea.vmem %s1744_s18, 512  ;;  %p1453_p5 = scmp.lt.s32.totalorder %s1744_s18, %s1744_s18 }
  0x21   : > { %p1446_p13 = scmp.ne.s32.totalorder %s1744_s18, %s1445_s21  ;;  %p1454_p4 = scmp.lt.s32.totalorder %s1445_s21, %s1445_s21 }
  0x23   : > { %p1448_p0 = pnand %p1446_p13, %p1771_p8  ;;  %p1455_p7 = por %p1454_p4, %p1453_p5 }
  0x25   : > { %p1449_p2 = pneg %p1448_p0 }
  0x27   : > { %p1456_p9 = pnand %p1455_p7, %p1449_p2 }
  0x29   : > { %1459 = shalt.err (!%p1456_p9)
}
  0x2a   : > { %s1653_s24 = smov 64   ;;  %s1654_s26 = smov 4  }
  0x2b   : > { %1339 = dma.hbm_to_vmem [thread:$0]  (!%p1755_p6), %s2073_s1, 512, %s1744_s18, [#allocation6], %s1653_s24, %s1653_s24, %s1654_s26  }
  0x2c   : > { %s1460_s12 = scalar_lea.hbm %s2058_s5, 1024 }
  0x2d   : > { %p1461_p4 = scmp.ne.s32.totalorder %s2058_s5, %s1460_s12  ;;  %p1467_p12 = scmp.lt.u32.totalorder %s1460_s12, %s2058_s5 }
  0x2f   : > { %p1463_p10 = pnand %p1461_p4, %p1771_p8 }
  0x31   : > { %p1464_p11 = pneg %p1463_p10 }
  0x33   : > { %p1469_p13 = pnand %p1467_p12, %p1464_p11 }
  0x35   : > { %1472 = shalt.err (!%p1469_p13)
}
  0x36   : > { %s1473_s18 = scalar_lea.vmem %s1759_s22, 1024  ;;  %p1481_p7 = scmp.lt.s32.totalorder %s1759_s22, %s1759_s22 }
  0x37   : > { %p1474_p0 = scmp.ne.s32.totalorder %s1759_s22, %s1473_s18  ;;  %p1482_p9 = scmp.lt.s32.totalorder %s1473_s18, %s1473_s18 }
  0x39   : > { %p1476_p2 = pnand %p1474_p0, %p1771_p8  ;;  %p1483_p4 = por %p1482_p9, %p1481_p7 }
  0x3b   : > { %p1477_p5 = pneg %p1476_p2 }
  0x3d   : > { %p1484_p10 = pnand %p1483_p4, %p1477_p5 }
  0x3f   : > { %1487 = shalt.err (!%p1484_p10)
}
  0x40   : > { %1345 = dma.hbm_to_vmem [thread:$0]  (!%p1755_p6), %s2058_s5, 1024, %s1759_s22, [#allocation9], %s1653_s24, %s1653_s24, %s1654_s26  }
  0x41   : > { %s1488_s29 = scalar_lea.hbm %s2056_s3, 1024 }
  0x42   : > { %p1489_p11 = scmp.ne.s32.totalorder %s2056_s3, %s1488_s29  ;;  %p1495_p0 = scmp.lt.u32.totalorder %s1488_s29, %s2056_s3 }
  0x44   : > { %p1491_p12 = pnand %p1489_p11, %p1771_p8 }
  0x46   : > { %p1492_p13 = pneg %p1491_p12 }
  0x48   : > { %p1497_p2 = pnand %p1495_p0, %p1492_p13 }
  0x4a   : > { %1500 = shalt.err (!%p1497_p2)
}
  0x4b   : > { %s1501_s22 = scalar_lea.vmem %s1761_s25, 1024  ;;  %p1509_p4 = scmp.lt.s32.totalorder %s1761_s25, %s1761_s25 }
  0x4c   : > { %p1502_p5 = scmp.ne.s32.totalorder %s1761_s25, %s1501_s22  ;;  %p1510_p10 = scmp.lt.s32.totalorder %s1501_s22, %s1501_s22 }
  0x4e   : > { %p1504_p7 = pnand %p1502_p5, %p1771_p8  ;;  %p1511_p11 = por %p1510_p10, %p1509_p4 }
  0x50   : > { %p1505_p9 = pneg %p1504_p7 }
  0x52   : > { %p1512_p12 = pnand %p1511_p11, %p1505_p9 }
  0x54   : > { %1515 = shalt.err (!%p1512_p12)
}
  0x55   : > { %1342 = dma.hbm_to_vmem [thread:$0]  (!%p1755_p6), %s2056_s3, 1024, %s1761_s25, [#allocation6], %s1653_s24, %s1653_s24, %s1654_s26  }
  0x56   : > { %s1655_s10 = smov [#allocation10]   ;;  %s1516_s30 = scalar_lea.hbm %s2062_s9, 2048 }
  0x57   : > { %s340_s27 = sshll.u32 %s1655_s10, 4  ;;  %p1517_p13 = scmp.ne.s32.totalorder %s2062_s9, %s1516_s30  ;;  %s341_s27 = int_to_ptr.vmem [resolvable:$true] %s340_s27 }
  0x58   : > { %p1523_p5 = scmp.lt.u32.totalorder %s1516_s30, %s2062_s9 }
  0x59   : > { %p1519_p0 = pnand %p1517_p13, %p1771_p8 }
  0x5b   : > { %p1520_p2 = pneg %p1519_p0 }
  0x5d   : > { %p1525_p7 = pnand %p1523_p5, %p1520_p2 }
  0x5f   : > { %1528 = shalt.err (!%p1525_p7)
}
  0x60   : > { %s1529_s25 = scalar_lea.vmem %s341_s27, 2048  ;;  %p1537_p11 = scmp.lt.s32.totalorder %s341_s27, %s341_s27 }
  0x61   : > { %p1530_p9 = scmp.ne.s32.totalorder %s341_s27, %s1529_s25  ;;  %p1538_p12 = scmp.lt.s32.totalorder %s1529_s25, %s1529_s25 }
  0x63   : > { %p1532_p4 = pnand %p1530_p9, %p1771_p8  ;;  %p1539_p1 = por %p1538_p12, %p1537_p11 }
  0x65   : > { %p1533_p10 = pneg %p1532_p4 }
  0x67   : > { %p1540_p3 = pnand %p1539_p1, %p1533_p10 }
  0x69   : > { %1543 = shalt.err (!%p1540_p3)
}
  0x6a   : > { %s1656_s24 = smov 128   ;;  %s1657_s11 = smov 8  }
  0x6b   : > { %1348 = dma.hbm_to_vmem [thread:$0]  (!%p1755_p6), %s2062_s9, 2048, %s341_s27, [#allocation9], %s1656_s24, %s1656_s24, %s1657_s11  }
  0x6c   : > { %s1043_s8 = sadd.s32 4294967294, %s1648_s16   ;;  %s1867_s10 = sadd.s32 1, %s1648_s16  }
  0x6d   : > { %s32_s28 = ssub.s32 %s1648_s16, %s1867_s10  ;;  %s35_s29 = sadd.s32 1, %s1644_s15 }
  0x6e   : > { %p33_p1 = scmp.eq.s32.totalorder %s32_s28, 0  ;;  %p42_p3 = scmp.ne.s32.totalorder %s1644_s15, %s1640_s14 }
  0x6f   : > { %p43_p8 = scmp.eq.s32.totalorder %s1648_s16, 0  ;;  %p48_p13 = scmp.ne.s32.totalorder %s1640_s14, %s1636_s13 }
  0x70   : > { %s1878_s30 = scalar_select %p33_p1, %s1644_s15, %s35_s29  }
  0x71   : > { %p1880_p0 = por %p43_p8, %p42_p3  ;;  %p2076_p2 = scmp.eq.s32.totalorder %s1739_s19, 0 }
  0x72   : > { %p261_p5 = scmp.eq.s32.totalorder %s1739_s19, 1  ;;  %p267_p7 = scmp.eq.s32.totalorder %s1043_s8, 1 }
  0x73   : > { %p1886_p6 = por %p2076_p2, %p48_p13  ;;  %p1361_p9 = scmp.lt.s32.totalorder %s1648_s16, 2 }
  0x74   : > { %s354_s12 = sand.u32 1, %s1644_s15   ;;  %p1893_p4 = por %p261_p5, %p42_p3 }
  0x75   : > { %p1897_p10 = por %p267_p7, %p48_p13  ;;  %s1050_s22 = sshll.u32 %s354_s12, 2 }
  0x76   : > { %s2078_s17 = scalar_select %p1893_p4, 1, 0 }
  0x77   : > { %s2079_s21 = scalar_select %p1897_p10, 1, 0 }
  0x78   : > { %s1051_s25 = sshll.u32 %s1648_s16, 6  ;;  %s358_s18 = scalar_lea.vmem [#allocation2], %s1050_s22 }
  0x79   : > { %s1905_s26 = scalar_lea.hbm %s2053_s0, %s1051_s25  ;;  %s365_s8 = sshll.u32 %s358_s18, 4  ;;  %s1907_s8 = int_to_ptr.vmem [resolvable:$true] %s365_s8 }
  0x7a   : > { %p1911_p11 = pnand %p1361_p9, %p1880_p0  ;;  %s355_s29 = scalar_lea.sflag [#allocation3], %s354_s12 }
  0x7b   : > { %s1544_s1 = scalar_lea.hbm %s1905_s26, 64  ;;  %s1549_s24 = scalar_lea.hbm %s2053_s0, 128 }
  0x7c   : > { %p1545_p12 = scmp.ne.s32.totalorder %s1905_s26, %s1544_s1  ;;  %p1546_p1 = pneg %p1911_p11 }
  0x7d   : > { %p1550_p13 = scmp.lt.u32.totalorder %s1905_s26, %s2053_s0  ;;  %p1551_p0 = scmp.lt.u32.totalorder %s1549_s24, %s1544_s1 }
  0x7e   : > { %p1547_p3 = pnand %p1546_p1, %p1545_p12  ;;  %p1553_p5 = scmp.lt.u32.totalorder %s1544_s1, %s1905_s26 }
  0x7f   : > { %p1552_p2 = por %p1551_p0, %p1550_p13 }
  0x80   : > { %p1548_p8 = pneg %p1547_p3 }
  0x81   : > { %p1554_p7 = por %p1553_p5, %p1552_p2 }
  0x83   : > { %p1555_p9 = pnand %p1554_p7, %p1548_p8 }
  0x85   : > { %1558 = shalt.err (!%p1555_p9)
}
  0x86   : > { %s1559_s12 = scalar_lea.vmem %s1907_s8, 64  ;;  %s1658_s18 = smov [#allocation2]  }
  0x87   : > { %p1560_p12 = scmp.ne.s32.totalorder %s1907_s8, %s1559_s12  ;;  %s1564_s22 = sshll.u32 %s1658_s18, 4  ;;  %s1565_s22 = int_to_ptr.vmem [resolvable:$false] %s1564_s22 }
  0x88   : > { %s1566_s25 = scalar_lea.vmem %s1565_s22, 128  ;;  %p1567_p4 = scmp.lt.s32.totalorder %s1907_s8, %s1565_s22 }
  0x89   : > { %p1562_p3 = pnand %p1560_p12, %p1546_p1  ;;  %p1568_p13 = scmp.lt.s32.totalorder %s1566_s25, %s1559_s12 }
  0x8b   : > { %p1563_p10 = pneg %p1562_p3  ;;  %p1569_p0 = por %p1568_p13, %p1567_p4 }
  0x8d   : > { %p1570_p2 = pnand %p1569_p0, %p1563_p10 }
  0x8f   : > { %1573 = shalt.err (!%p1570_p2)
}
  0x90   : > { %1352 = dma.hbm_to_vmem [thread:$0]  (!%p1911_p11), %s1905_s26, 64, %s1907_s8, %s355_s29  }
  0x91   : > { %p2081_p8 = scmp.ne.s32.totalorder %s2071_s20, 0 }
  0x92   : > { %s1943_s1 = sand.u32 (!%p2081_p8), 1, %s1640_s14  }
  0x93   : > { %374 = sbr.rel (%p2081_p8) target bundleno = 1290 (0x50a), region = 60  ;;  %s1053_s24 = sshll.u32 (!%p2081_p8), %s1943_s1, 2 }
  0x94   : > { %s377_s23 = scalar_lea.sflag (!%p2081_p8), [#allocation3], %s1943_s1  ;;  %s380_s11 = scalar_lea.vmem (!%p2081_p8), [#allocation2], %s1053_s24 }
  0x9a   : > { %1619 = dma.done.wait (%p1886_p6), %s377_s23, 64  }
  0x9b   : > { %1621 = vsyncadd (%p1886_p6), %s377_s23, 4294967232  ;;  %p2082_p4 = scmp.eq.s32.totalorder %s1739_s19, 0 }
  0x9d   : > { %1623 = dma.done.wait (%p2082_p4), [#allocation6], 1536   ;;  %p2083_p10 = pmov %p2082_p4 }
  0x9e   : > { %p2084_p11 = pmov %p2082_p4 }
  0x9f   : > { %1625 = vsyncadd (%p2083_p10), [#allocation6], 4294965760 }
  0xa0   : > { %1627 = dma.done.wait (%p2084_p11), [#allocation9], 3072   ;;  %p2085_p1 = pmov %p2082_p4 }
  0xa1   : > { %v1659_v0 = vmov 0.0   ;;  %vm1660_vm0 = vmmov 0   ;;  %v1410_v1 = vld [vmem:[#allocation5] sm:$0xff]   ;;  %v1411_v2 = vld [vmem:[#allocation5 + $0x8] sm:$0xff]   ;;  %v1412_v4 = vld [vmem:[#allocation5 + $0x10] sm:$0xff]   ;;  %vm474_vm1 = vcmask 523264  }
  0xa2   : > { %1629 = vsyncadd (%p2085_p1), [#allocation9], 4294964224  ;;  %1146 = vmatprep.subr.bf16.mxu0 %v1659_v0  ;;  %1154 = vmatprep.mubr.msk.bf16.mxu0 %vm1660_vm0, %v1659_v0  ;;  %v1414_v3 = vld [vmem:[#allocation7] sm:$0xff]   ;;  %v1415_v5 = vld [vmem:[#allocation7 + $0x8] sm:$0xff]   ;;  %v1661_v33 = vmov 0.0|0.0   ;;  %s1058_s12 = sshll.u32 %s1943_s1, 3 }
  0xa3   : > { %1158 = vmatprep.subr.bf16.mxu1 %v1659_v0  ;;  %1174 = vmatprep.mubr.msk.bf16.mxu1 %vm1660_vm0, %v1659_v0  ;;  %v1413_v6 = vld [vmem:[#allocation5 + $0x18] sm:$0xff]   ;;  %v1416_v7 = vld [vmem:[#allocation7 + $0x10] sm:$0xff]   ;;  %v1418_v10 = vld [vmem:[#allocation7 + $0x20] sm:$0xff]   ;;  %s2086_s23 = sld [smem:[#allocation17_spill]]  ;;  %s432_s20 = scalar_lea.vmem [#allocation11], %s1058_s12 }
  0xa4   : > { %1147 = vmatpush3.bf16.msra.mxu0 %v1410_v1  ;;  %1159 = vmatpush3.bf16.msra.mxu1 %v1414_v3  ;;  %v434_v8 = vld [vmem:[%s380_s11] sm:$0xf]  ;;  %v1419_v11 = vld [vmem:[#allocation7 + $0x28] sm:$0xff]   ;;  %v1420_v12 = vld [vmem:[#allocation7 + $0x30] sm:$0xff]   ;;  %s1086_s11 = sshll.u32 %s1739_s19, 7  ;;  %s935_s27 = sshll.u32 %s432_s20, 4  ;;  %s2011_s27 = int_to_ptr.vmem [resolvable:$true] %s935_s27 }
  0xa5   : > { %1148 = vmatprep.subr.bf16.mxu0 %v1659_v0  ;;  %1160 = vmatprep.subr.bf16.mxu1 %v1659_v0  ;;  %v1417_v9 = vld [vmem:[#allocation7 + $0x18] sm:$0xff]   ;;  %v1422_v14 = vld [vmem:[#allocation8] sm:$0xff]   ;;  %v1423_v15 = vld [vmem:[#allocation8 + $0x8] sm:$0xff]   ;;  %s2087_s28 = sld [smem:[#allocation18_spill]]  ;;  %s922_s18 = scalar_lea.sflag [#allocation4], %s1943_s1 }
  0xa6   : > { %v1421_v13 = vld [vmem:[#allocation7 + $0x38] sm:$0xff]   ;;  %v1424_v16 = vld [vmem:[#allocation8 + $0x10] sm:$0xff]   ;;  %v1426_v18 = vld [vmem:[#allocation8 + $0x20] sm:$0xff]   ;;  %s1574_s22 = scalar_lea.vmem %s2011_s27, 128  ;;  %p2088_p5 = scmp.ne.s32.totalorder %s2078_s17, 0 }
  0xa7   : > { %v1425_v17 = vld [vmem:[#allocation8 + $0x18] sm:$0xff]   ;;  %v1427_v19 = vld [vmem:[#allocation8 + $0x28] sm:$0xff]   ;;  %v1428_v28 = vld [vmem:[#allocation8 + $0x30] sm:$0xff]   ;;  %p1575_p6 = scmp.ne.s32.totalorder %s2011_s27, %s1574_s22  ;;  %s1662_s19 = smov [#allocation11]  }
  0xa8   : > { %1149 = vmatpush3.bf16.msra.mxu0 %v1411_v2  ;;  %1161 = vmatpush3.bf16.msra.mxu1 %v1415_v5  ;;  %v1059_v20 = vld [vmem:[%s2055_s2] ss:$0 sm:$0xff]  ;;  %v744_v30 = vld [vmem:[#allocation10] sm:$0xff]  ;;  %v745_v31 = vld [vmem:[#allocation10 + $0x8] sm:$0xff]  ;;  %s1578_s12 = sshll.u32 %s1662_s19, 4  ;;  %s1579_s12 = int_to_ptr.vmem [resolvable:$false] %s1578_s12 }
  0xa9   : > { %1150 = vmatprep.subr.bf16.mxu0 %v1659_v0  ;;  %1162 = vmatprep.subr.bf16.mxu1 %v1659_v0  ;;  %v1429_v29 = vld [vmem:[#allocation8 + $0x38] sm:$0xff]   ;;  %v746_v32 = vld [vmem:[#allocation10 + $0x10] sm:$0xff]  ;;  %v1269_v34 = vpack.c.bf16 %v745_v31, %v744_v30  ;;  %v748_v37 = vld [vmem:[#allocation10 + $0x20] sm:$0xff]  ;;  %p1576_p7 = pnand %p1575_p6, %p2088_p5  ;;  %s1580_s25 = scalar_lea.vmem %s1579_s12, 256 }
  0xaa   : > { %v747_v35 = vld [vmem:[#allocation10 + $0x18] sm:$0xff]  ;;  %v749_v38 = vld [vmem:[#allocation10 + $0x28] sm:$0xff]  ;;  %v750_v40 = vld [vmem:[#allocation10 + $0x30] sm:$0xff]  ;;  %p1581_p12 = scmp.lt.s32.totalorder %s2011_s27, %s1579_s12  ;;  %p1582_p3 = scmp.lt.s32.totalorder %s1580_s25, %s1574_s22 }
  0xab   : > { %v1272_v36 = vpack.c.bf16 %v747_v35, %v746_v32  ;;  %v1275_v39 = vpack.c.bf16 %v749_v38, %v748_v37  ;;  %v751_v41 = vld [vmem:[#allocation10 + $0x38] sm:$0xff]  ;;  %v752_v43 = vld [vmem:[#allocation10 + $0x40] sm:$0xff]  ;;  %v753_v44 = vld [vmem:[#allocation10 + $0x48] sm:$0xff]  ;;  %s2009_s29 = scalar_lea.hbm %s2087_s28, %s1086_s11  ;;  %p1577_p9 = pneg %p1576_p7 }
  0xac   : > { %1151 = vmatpush3.bf16.msra.mxu0 %v1412_v4  ;;  %1163 = vmatpush3.bf16.msra.mxu1 %v1416_v7  ;;  %v1278_v42 = vpack.c.bf16 %v751_v41, %v750_v40  ;;  %v1281_v45 = vpack.c.bf16 %v753_v44, %v752_v43  ;;  %v754_v46 = vld [vmem:[#allocation10 + $0x50] sm:$0xff]  ;;  %v755_v47 = vld [vmem:[#allocation10 + $0x58] sm:$0xff]  ;;  %v756_v49 = vld [vmem:[#allocation10 + $0x60] sm:$0xff]  ;;  %p1583_p13 = por %p1582_p3, %p1581_p12 }
  0xad   : > { %1152 = vmatprep.subr.bf16.mxu0 %v1659_v0  ;;  %1164 = vmatprep.subr.bf16.mxu1 %v1659_v0  ;;  %v1284_v48 = vpack.c.bf16 %v755_v47, %v754_v46  ;;  %v757_v50 = vld [vmem:[#allocation10 + $0x68] sm:$0xff]  ;;  %v1065_v52 = vld [vmem:[%s2057_s4] ss:$0 sm:$0xff]  ;;  %v758_v60 = vld [vmem:[#allocation10 + $0x70] sm:$0xff] }
  0xae   : > { %v1287_v51 = vpack.c.bf16 %v757_v50, %v756_v49  ;;  %v759_v61 = vld [vmem:[#allocation10 + $0x78] sm:$0xff]  ;;  %p1584_p0 = pnand %p1583_p13, %p1577_p9 }
  0xaf   : > { %v1290_v62 = vpack.c.bf16 %v759_v61, %v758_v60  ;;  %v1074_v63 = vld [vmem:[%s2059_s6] ss:$0 sm:$0xff] }
  0xb0   : > { %1153 = vmatpush3.bf16.msra.mxu0 %v1413_v6  ;;  %1165 = vmatpush3.bf16.msra.mxu1 %v1417_v9 }
  0xb1   : > { %1178 = vmatprep.subr.bf16.mxu0 %v1659_v0  ;;  %1166 = vmatprep.subr.bf16.mxu1 %v1659_v0 }
  0xb3   : > { %1155 = vmatmul.mubr.msk.bf16.vlgmr.msra.gmra.mrb[0].mxu0 %vm474_vm1, %v434_v8 }
  0xb4   : > { %1194 = vmatprep.mubr.msk.bf16.mxu0 %vm1660_vm0, %v1659_v0  ;;  %1167 = vmatpush3.bf16.msra.mxu1 %v1418_v10 }
  0xb5   : > { %1168 = vmatprep.subr.bf16.mxu1 %v1659_v0  ;;  %1179 = vmatpush3.bf16.msra.mxu0 %v1422_v14 }
  0xb6   : > { %1180 = vmatprep.subr.bf16.mxu0 %v1659_v0 }
  0xb8   : > { %1169 = vmatpush3.bf16.msra.mxu1 %v1419_v11 }
  0xb9   : > { %1170 = vmatprep.subr.bf16.mxu1 %v1659_v0  ;;  %1181 = vmatpush3.bf16.msra.mxu0 %v1423_v15  ;;  %v1084_v15 = vld [vmem:[%s2086_s23] ss:$0 sm:$0xff] }
  0xba   : > { %1182 = vmatprep.subr.bf16.mxu0 %v1659_v0 }
  0xbc   : > { %1171 = vmatpush3.bf16.msra.mxu1 %v1420_v12 }
  0xbd   : > { %1172 = vmatprep.subr.bf16.mxu1 %v1659_v0  ;;  %1183 = vmatpush3.bf16.msra.mxu0 %v1424_v16 }
  0xbe   : > { %1184 = vmatprep.subr.bf16.mxu0 %v1659_v0 }
  0xc0   : > { %1173 = vmatpush3.bf16.msra.mxu1 %v1421_v13  ;;  %v1083_v13 = vld [vmem:[%s2060_s7] ss:$0 sm:$0xff] }
  0xc1   : > { %1185 = vmatpush3.bf16.msra.mxu0 %v1425_v17  ;;  %1268 = vmatprep.subr.bf16.mxu1 %v1661_v33 }
  0xc2   : > { %1186 = vmatprep.subr.bf16.mxu0 %v1659_v0 }
  0xc5   : > { %1187 = vmatpush3.bf16.msra.mxu0 %v1426_v18 }
  0xc6   : > { %1188 = vmatprep.subr.bf16.mxu0 %v1659_v0 }
  0xc9   : > { %1189 = vmatpush3.bf16.msra.mxu0 %v1427_v19 }
  0xca   : > { %1190 = vmatprep.subr.bf16.mxu0 %v1659_v0 }
  0xcd   : > { %1191 = vmatpush3.bf16.msra.mxu0 %v1428_v28 }
  0xce   : > { %1192 = vmatprep.subr.bf16.mxu0 %v1659_v0 }
  0xd1   : > { %1193 = vmatpush3.bf16.msra.mxu0 %v1429_v29 }
  0xd2   : > { %1292 = vmatprep.subr.bf16.mxu0 %v1661_v33 }
 0x186   : > { %v512_v21 = vpop.f32.mrb[0].mxu0 }
 0x187   : > { %v513_v22 = vadd.f32 %v1059_v20, %v512_v21  ;;  %v1156_v23 = vpop.f32.mrb[1].mxu0 }
 0x188   : > { %v515_v24 = vpop.f32.mrb[2].mxu0 }
 0x189   : > { %v518_v25 = vmax.f32 %v513_v22, 0.0  ;;  %v1157_v26 = vpop.f32.mrb[3].mxu0 }
 0x18b   : > { %v519_v27 = vpack.c.bf16 %v518_v25, %v518_v25 }
 0x18d   : > { %1175 = vmatmul.mubr.bf16.vlgmr.msra.gmra.mrb[0].mxu1 %v519_v27 }
 0x18e   : > { %1230 = vmatprep.mubr.msk.f32.mxu1 %vm1660_vm0, %v1659_v0  ;;  %1270 = vmatpush3.bf16.msra.mxu1 %v1269_v34 }
 0x18f   : > { %1271 = vmatprep.subr.bf16.mxu1 %v1661_v33 }
 0x192   : > { %1273 = vmatpush3.bf16.msra.mxu1 %v1272_v36 }
 0x193   : > { %1274 = vmatprep.subr.bf16.mxu1 %v1661_v33 }
 0x196   : > { %1276 = vmatpush3.bf16.msra.mxu1 %v1275_v39 }
 0x197   : > { %1277 = vmatprep.subr.bf16.mxu1 %v1661_v33 }
 0x19a   : > { %1279 = vmatpush3.bf16.msra.mxu1 %v1278_v42 }
 0x19b   : > { %1280 = vmatprep.subr.bf16.mxu1 %v1661_v33 }
 0x19e   : > { %1282 = vmatpush3.bf16.msra.mxu1 %v1281_v45 }
 0x19f   : > { %1283 = vmatprep.subr.bf16.mxu1 %v1661_v33 }
 0x1a2   : > { %1285 = vmatpush3.bf16.msra.mxu1 %v1284_v48 }
 0x1a3   : > { %1286 = vmatprep.subr.bf16.mxu1 %v1661_v33 }
 0x1a6   : > { %1288 = vmatpush3.bf16.msra.mxu1 %v1287_v51 }
 0x1a7   : > { %1289 = vmatprep.subr.bf16.mxu1 %v1661_v33 }
 0x1aa   : > { %1291 = vmatpush3.bf16.msra.mxu1 %v1290_v62 }
 0x260   : > { %v625_v53 = vpop.f32.mrb[0].mxu1 }
 0x261   : > { %v626_v54 = vadd.f32 %v1065_v52, %v625_v53  ;;  %v1176_v55 = vpop.f32.mrb[1].mxu1 }
 0x262   : > { %v628_v56 = vpop.f32.mrb[2].mxu1 }
 0x263   : > { %v631_v57 = vmax.f32 %v626_v54, 0.0  ;;  %v1177_v58 = vpop.f32.mrb[3].mxu1 }
 0x265   : > { %v632_v59 = vpack.c.bf16 %v631_v57, %v631_v57 }
 0x267   : > { %1195 = vmatmul.mubr.bf16.vlgmr.msra.gmra.mrb[4].mxu0 %v632_v59 }
 0x268   : > { %1294 = vmatpush3.bf16.msra.mxu0 %v1269_v34  ;;  %1265 = vmatprep.mubr.msk.f32.mxu0 %vm1660_vm0, %v1659_v0 }
 0x269   : > { %1295 = vmatprep.subr.bf16.mxu0 %v1661_v33 }
 0x26c   : > { %1297 = vmatpush3.bf16.msra.mxu0 %v1272_v36 }
 0x26d   : > { %1298 = vmatprep.subr.bf16.mxu0 %v1661_v33 }
 0x270   : > { %1300 = vmatpush3.bf16.msra.mxu0 %v1275_v39 }
 0x271   : > { %1301 = vmatprep.subr.bf16.mxu0 %v1661_v33 }
 0x274   : > { %1303 = vmatpush3.bf16.msra.mxu0 %v1278_v42 }
 0x275   : > { %1304 = vmatprep.subr.bf16.mxu0 %v1661_v33 }
 0x278   : > { %1306 = vmatpush3.bf16.msra.mxu0 %v1281_v45 }
 0x279   : > { %1307 = vmatprep.subr.bf16.mxu0 %v1661_v33 }
 0x27c   : > { %1309 = vmatpush3.bf16.msra.mxu0 %v1284_v48 }
 0x27d   : > { %1310 = vmatprep.subr.bf16.mxu0 %v1661_v33 }
 0x280   : > { %1312 = vmatpush3.bf16.msra.mxu0 %v1287_v51 }
 0x281   : > { %1313 = vmatprep.subr.bf16.mxu0 %v1661_v33 }
 0x284   : > { %1315 = vmatpush3.bf16.msra.mxu0 %v1290_v62 }
 0x33a   : > { %v738_v0 = vpop.f32.mrb[4].mxu0 }
 0x33b   : > { %v739_v1 = vadd.f32 %v1074_v63, %v738_v0  ;;  %v1196_v2 = vpop.f32.mrb[5].mxu0 }
 0x33c   : > { %v741_v3 = vpop.f32.mrb[6].mxu0 }
 0x33d   : > { %v1197_v4 = vpop.f32.mrb[7].mxu0  ;;  %1231 = vmatmul.mubr.f32.vlgmr.msra.gmra.mrb[4].mxu1 %v739_v1 }
 0x410   : > { %v826_v5 = vpop.f32.mrb[4].mxu1 }
 0x411   : > { %v830_v6 = vsub.f32 %v739_v1, %v826_v5  ;;  %v1232_v7 = vpop.f32.mrb[5].mxu1 }
 0x413   : > { %v831_v8 = vmul.f32 %v830_v6, %v830_v6 }
 0x415   : > { %1266 = vmatmul.mubr.f32.vlgmr.msra.gmra.mrb[8].mxu0 %v831_v8 }
 0x4e8   : > { %v898_v9 = vpop.f32.mrb[8].mxu0 }
 0x4e9   : > { %v899_v10 = vadd.f32 1e-05, %v898_v9  ;;  %v1267_v11 = vpop.f32.mrb[9].mxu0 }
 0x4eb   : > { %1430 = vrsqrt.f32 %v899_v10 }
 0x4f5   : > { %v1431_v12 = vpop.eup %1430 }
 0x4f6   : > { %v903_v14 = vmul.f32 %v1431_v12, %v830_v6 }
 0x4f8   : > { %v911_v16 = vmul.f32 %v1083_v13, %v903_v14 }
 0x4fa   : > { %v919_v17 = vadd.f32 %v1084_v15, %v911_v16 }
 0x4fc   : > { %920 = vst [vmem:[%s432_s20] sm:$0xff] %v919_v17 }
 0x4fd   : > { %1587 = shalt.err (!%p1584_p0)
}
 0x4fe   : > { %s1588_s1 = scalar_lea.hbm %s2009_s29, 128  ;;  %s1592_s11 = scalar_lea.hbm %s2087_s28, 256 }
 0x4ff   : > { %p1589_p2 = scmp.ne.s32.totalorder %s2009_s29, %s1588_s1  ;;  %p1593_p10 = scmp.lt.u32.totalorder %s2009_s29, %s2087_s28 }
 0x500   : > { %p1594_p11 = scmp.lt.u32.totalorder %s1592_s11, %s1588_s1  ;;  %p1596_p6 = scmp.lt.u32.totalorder %s1588_s1, %s2009_s29 }
 0x501   : > { %p1590_p8 = pnand %p1589_p2, %p2088_p5 }
 0x502   : > { %p1595_p1 = por %p1594_p11, %p1593_p10 }
 0x503   : > { %p1591_p4 = pneg %p1590_p8 }
 0x504   : > { %p1597_p7 = por %p1596_p6, %p1595_p1 }
 0x506   : > { %p1598_p9 = pnand %p1597_p7, %p1591_p4 }
 0x508   : > { %1601 = shalt.err (!%p1598_p9)
}
 0x509   : > { %1334 = dma.vmem_to_hbm [thread:$0]  (%p2088_p5), %s2011_s27, 128, %s2009_s29, %s922_s18  }
 0x50a PF: > { %s947_s8 = sand.u32 1, %s1636_s13   ;;  %p2089_p12 = scmp.ne.s32.totalorder %s2079_s21, 0 }
 0x50b   : > { %p2090_p3 = scmp.ge.s32.totalorder %s1648_s16, 2  ;;  %s948_s22 = scalar_lea.sflag [#allocation4], %s947_s8 }
 0x50d   : > { %p1354_p13 = pnand %p2090_p3, %p2089_p12 }
 0x50f   : > { %1631 = dma.done.wait (!%p1354_p13), %s948_s22, 128  }
 0x510   : > { %1633 = vsyncadd (!%p1354_p13), %s948_s22, 4294967168  ;;  %p25_p0 = scmp.ge.s32.totalorder %s1867_s10, 4   ;;  %s2091_s13 = smov %s1640_s14 }
 0x511   : > { %s2092_s14 = smov %s1644_s15  ;;  %s2093_s15 = smov %s1878_s30 }
 0x512   : > { %s2094_s16 = smov %s1867_s10  ;;  %27 = sbr.rel (!%p25_p0) target bundleno = 11 (0xb), region = 121 }
 0x519   :  { %953 = vsyncpa [#allocation3], 1 }
 0x51a   :  { %955 = vsyncpa [#allocation3 + $0x1], 1 }
 0x51b   :  { %956 = vsyncpa [#allocation6], 1 }
 0x51c   :  { %957 = vsyncpa [#allocation9], 1 }
 0x51d   :  { %958 = vsyncpa [#allocation4], 1 }
 0x51e   :  { %960 = vsyncpa [#allocation4 + $0x1], 1 }

</bundles_post_ra>
